<compile_context>
chip_gen: v6e
topology: v6e:2x2x1
jax: 0.10.0
libtpu: 0.0.40
codegen_flags: <defaults>
</compile_context>

<pallas_src>
import math

import jax
import jax.numpy as jnp
from jax.experimental import pallas as pl
from jax.experimental.pallas import tpu as pltpu


def _round_up(a, m):
    return (a + m - 1) // m * m


def _vmem_capacity_bytes():
    """Best-effort VMEM capacity query; conservative (v7x-sized) fallback."""
    try:
        return int(pltpu.get_tpu_info().vmem_capacity_bytes)
    except Exception:
        return 64 << 20


def _pick_tm(n, tm_default=256):
    """Row tile: big, but <= ~ceil(N/2) so v7x gets >= 2 row tiles to shard."""
    half = _round_up(max(1, (n + 1) // 2), 16)
    return int(max(16, min(tm_default, half)))


def _pick_tk(d_in, tk_max):
    """K tile (multiple of 128) that divides d_in -> no K padding for typical d_in."""
    tk_max = max(128, (tk_max // 128) * 128)
    if d_in % 128 == 0:
        for cand in range(min(tk_max, d_in), 127, -128):
            if d_in % cand == 0:
                return cand, d_in
    # Rare fallback (d_in not a multiple of 128): minimal K pad.
    k_pad = _round_up(d_in, 128)
    for cand in range(min(tk_max, k_pad), 127, -128):
        if k_pad % cand == 0:
            return cand, k_pad
    return 128, k_pad


# --------------------------------------------------------------------------- kernels

def simclr_fused_kernel(x_ref, wb_ref, bb_ref, w1_ref, b1_ref, w2_ref, b2_ref,
                        f_ref, z_ref):
    """Resident-Wb path: one row tile per grid step, whole network fused."""
    x = x_ref[...].astype(jnp.bfloat16)                       # in-kernel cast (VPU, free)
    f = jnp.dot(x, wb_ref[...], preferred_element_type=jnp.float32) + bb_ref[...]
    h = jnp.dot(f.astype(jnp.bfloat16), w1_ref[...],
                preferred_element_type=jnp.float32) + b1_ref[...]
    h = jnp.maximum(h, 0.0)
    z = jnp.dot(h.astype(jnp.bfloat16), w2_ref[...],
                preferred_element_type=jnp.float32) + b2_ref[...]
    f_ref[...] = f.astype(f_ref.dtype)
    z_ref[...] = z.astype(z_ref.dtype)


def simclr_ktiled_kernel(x_ref, wb_ref, bb_ref, w1_ref, b1_ref, w2_ref, b2_ref,
                         f_ref, z_ref, acc_ref):
    """K-tiled path: backbone Linear reduced over the K grid axis into acc_ref."""
    k = pl.program_id(1)

    @pl.when(k == 0)
    def _():
        # Fold the backbone bias into the accumulator init (saves one VPU add/tile).
        acc_ref[...] = jnp.broadcast_to(bb_ref[...], acc_ref.shape)

    acc_ref[...] += jnp.dot(x_ref[...].astype(jnp.bfloat16), wb_ref[...],
                            preferred_element_type=jnp.float32)

    @pl.when(k == pl.num_programs(1) - 1)
    def _():
        f = acc_ref[...]                                      # f32 [tm, d_feat], bias included
        h = jnp.dot(f.astype(jnp.bfloat16), w1_ref[...],
                    preferred_element_type=jnp.float32) + b1_ref[...]
        h = jnp.maximum(h, 0.0)
        z = jnp.dot(h.astype(jnp.bfloat16), w2_ref[...],
                    preferred_element_type=jnp.float32) + b2_ref[...]
        f_ref[...] = f.astype(f_ref.dtype)
        z_ref[...] = z.astype(z_ref.dtype)


# --------------------------------------------------------------------------- wrapper

def simclr_forward(x, params, *, tm=None, tk_max=None, out_dtype=jnp.bfloat16,
                   force_k_tiled=False):
    """x: [B, n_views, C, H, W]  ->  dict(z=[N, proj_out], f=[N, proj_in])."""
    B, V = x.shape[0], x.shape[1]
    N = B * V
    d_in = math.prod(x.shape[2:])

    wb, bb, w1, b1, w2, b2 = (params[k] for k in ("wb", "bb", "w1", "b1", "w2", "b2"))
    d_feat, d_hid, d_out = wb.shape[1], w1.shape[1], w2.shape[1]

    capacity = _vmem_capacity_bytes()

    # Weights pre-cast to bf16 (MXU-native, re-read across row tiles); biases f32.
    # x is NOT pre-cast: it is streamed once in its native dtype and cast in-kernel.
    wb_bf = wb.astype(jnp.bfloat16)
    w1_bf = w1.astype(jnp.bfloat16)
    w2_bf = w2.astype(jnp.bfloat16)
    bb32 = bb.astype(jnp.float32)
    b132 = b1.astype(jnp.float32)
    b232 = b2.astype(jnp.float32)

    # x.view(-1, *x.shape[2:]) + row-major flatten of each image (free reshape).
    x2 = x.reshape(N, d_in)

    if tm is None:
        tm = _pick_tm(N)

    # Keep full-resident Wb only when it is a small slice of VMEM (safe on v7x too).
    resident = (not force_k_tiled) and (d_in * d_feat * 2 <= capacity // 4)
    if resident:
        tk, k_pad, k_tiles = d_in, d_in, 1
    else:
        if tk_max is None:
            tk_max = 2048 if capacity >= (100 << 20) else 1024
        tk, k_pad = _pick_tk(d_in, tk_max)
        k_tiles = k_pad // tk

    out_bytes = jnp.dtype(out_dtype).itemsize
    x_bytes = jnp.dtype(x.dtype).itemsize

    def vmem_est(tm_):
        e = tm_ * tk * x_bytes * 2                                # x tiles (double buffered)
        e += tk * d_feat * 2 * (1 if resident else 2)             # Wb
        e += (d_feat * d_hid + d_hid * d_out) * 2                 # W1, W2 (Buffered(1))
        e += (d_feat + d_hid + d_out) * 4                         # biases
        e += tm_ * (d_feat + d_out) * out_bytes * 2               # f/z output buffers
        if not resident:
            e += tm_ * d_feat * 4                                 # f32 accumulator
        return e

    # Keep the footprint well under the physical VMEM of the smallest chip we target.
    while vmem_est(tm) > (capacity * 7) // 10 and tm > 64:
        tm = max(64, tm // 2)

    n_pad = _round_up(N, tm)

    # Row padding only when needed; K padding only in the rare d_in % 128 != 0 fallback.
    if n_pad != N or k_pad != d_in:
        x2 = jnp.pad(x2, ((0, n_pad - N), (0, k_pad - d_in)))
    if k_pad != d_in:
        wb_bf = jnp.pad(wb_bf, ((0, k_pad - d_in), (0, 0)))

    est = vmem_est(tm)
    vmem_limit = None
    if est > (30 << 20):  # above the default scoped limit -> raise it explicitly
        vmem_limit = int(min(est + est // 4, (capacity * 3) // 4))

    const_kw = dict(pipeline_mode=pl.Buffered(1))  # single-buffer constant-index blocks

    if resident:
        grid = (n_pad // tm,)
        kernel = simclr_fused_kernel
        dims = ("parallel",)
        in_specs = [
            pl.BlockSpec((tm, d_in), lambda i: (i, 0)),                       # x tile (streamed)
            pl.BlockSpec((d_in, d_feat), lambda i: (0, 0), **const_kw),       # Wb (resident)
            pl.BlockSpec((1, d_feat), lambda i: (0, 0), **const_kw),          # bb
            pl.BlockSpec((d_feat, d_hid), lambda i: (0, 0), **const_kw),      # W1
            pl.BlockSpec((1, d_hid), lambda i: (0, 0), **const_kw),           # b1
            pl.BlockSpec((d_hid, d_out), lambda i: (0, 0), **const_kw),       # W2
            pl.BlockSpec((1, d_out), lambda i: (0, 0), **const_kw),           # b2
        ]
        out_specs = (
            pl.BlockSpec((tm, d_feat), lambda i: (i, 0)),
            pl.BlockSpec((tm, d_out), lambda i: (i, 0)),
        )
        scratch = []
        wb_reads = 1
    else:
        grid = (n_pad // tm, k_tiles)
        kernel = simclr_ktiled_kernel
        dims = ("parallel", "arbitrary")
        in_specs = [
            pl.BlockSpec((tm, tk), lambda i, k: (i, k)),                      # x tile (streamed)
            pl.BlockSpec((tk, d_feat), lambda i, k: (k, 0)),                  # Wb tile (streamed)
            pl.BlockSpec((1, d_feat), lambda i, k: (0, 0), **const_kw),       # bb
            pl.BlockSpec((d_feat, d_hid), lambda i, k: (0, 0), **const_kw),   # W1
            pl.BlockSpec((1, d_hid), lambda i, k: (0, 0), **const_kw),        # b1
            pl.BlockSpec((d_hid, d_out), lambda i, k: (0, 0), **const_kw),    # W2
            pl.BlockSpec((1, d_out), lambda i, k: (0, 0), **const_kw),        # b2
        ]
        out_specs = (
            pl.BlockSpec((tm, d_feat), lambda i, k: (i, 0)),                  # resident over k
            pl.BlockSpec((tm, d_out), lambda i, k: (i, 0)),                   # resident over k
        )
        scratch = [pltpu.VMEM((tm, d_feat), jnp.float32)]                     # backbone accumulator
        wb_reads = n_pad // tm

    cost = pl.CostEstimate(
        flops=2 * n_pad * (k_pad * d_feat + d_feat * d_hid + d_hid * d_out),
        transcendentals=0,
        bytes_accessed=int(n_pad * k_pad * x_bytes
                           + k_pad * d_feat * 2 * wb_reads
                           + (d_feat * d_hid + d_hid * d_out) * 2
                           + (d_feat + d_hid + d_out) * 4
                           + n_pad * (d_feat + d_out) * out_bytes),
    )

    cp_kwargs = dict(dimension_semantics=dims)
    if vmem_limit is not None:
        cp_kwargs["vmem_limit_bytes"] = vmem_limit

    f, z = pl.pallas_call(
        kernel,
        out_shape=(
            jax.ShapeDtypeStruct((n_pad, d_feat), out_dtype),   # f
            jax.ShapeDtypeStruct((n_pad, d_out), out_dtype),    # z
        ),
        grid_spec=pltpu.PrefetchScalarGridSpec(
            num_scalar_prefetch=0,
            grid=grid,
            in_specs=in_specs,
            out_specs=out_specs,
            scratch_shapes=scratch,
        ),
        compiler_params=pltpu.CompilerParams(**cp_kwargs),
        cost_estimate=cost,
    )(x2, wb_bf, bb32, w1_bf, b132, w2_bf, b232)

    # Padded rows are garbage/bias-only by construction -> always slice to N.
    return {"z": z[:N], "f": f[:N]}


def init_params(key, d_in, proj_in, proj_hid, proj_out):
    """Deterministic PyTorch-Linear-style init: U(-1/sqrt(fan_in), 1/sqrt(fan_in))."""
    ks = jax.random.split(key, 6)

    def lin(kw, kb, fan_in, fan_out):
        bound = 1.0 / jnp.sqrt(fan_in)
        w = jax.random.uniform(kw, (fan_in, fan_out), jnp.float32, -bound, bound)
        b = jax.random.uniform(kb, (1, fan_out), jnp.float32, -bound, bound)
        return w, b

    wb, bb = lin(ks[0], ks[1], d_in, proj_in)
    w1, b1 = lin(ks[2], ks[3], proj_in, proj_hid)
    w2, b2 = lin(ks[4], ks[5], proj_hid, proj_out)
    return {"wb": wb, "bb": bb, "w1": w1, "b1": b1, "w2": w2, "b2": b2}


if __name__ == "__main__":
    # Small shapes consistent with the module's forward:
    #   x: [B=2, n_views=2, C=4, H=8, W=8]  -> N = 4, D_in = 256
    #   projector_in_dim=128, proj_hidden_dim=256, proj_output_dim=256
    B, V, C, H, W = 2, 2, 4, 8, 8
    proj_in, proj_hid, proj_out = 128, 256, 256
    d_in = C * H * W

    key = jax.random.PRNGKey(0)
    kx, kp = jax.random.split(key)
    x = jax.random.normal(kx, (B, V, C, H, W), jnp.float32)
    params = init_params(kp, d_in, proj_in, proj_hid, proj_out)

    # Reference in plain JAX with the same bf16 operand quantization / f32 accum
    # as the kernel (same semantics as the PyTorch module, bf16 matmul inputs).
    q = lambda a: a.astype(jnp.bfloat16).astype(jnp.float32)
    x2 = x.reshape(B * V, d_in)
    f_ref = q(x2) @ q(params["wb"]) + params["bb"]
    h_ref = jnp.maximum(q(f_ref) @ q(params["w1"]) + params["b1"], 0.0)
    z_ref = q(h_ref) @ q(params["w2"]) + params["b2"]

    # Path 1 (default for this size): resident-Wb fused kernel, 1-D row grid.
    out = jax.jit(simclr_forward)(x, params)
    jax.block_until_ready(out)

    # Path 2: K-tiled reduction path (what very large d_in / v7x uses), forced here
    # with a small tk so both code paths are compiled and checked on-device.
    out_kt = jax.jit(
        lambda xx, pp: simclr_forward(xx, pp, force_k_tiled=True, tk_max=128)
    )(x, params)
    jax.block_until_ready(out_kt)

    for o in (out, out_kt):
        assert o["f"].shape == (B * V, proj_in)
        assert o["z"].shape == (B * V, proj_out)
        assert jnp.allclose(o["f"].astype(jnp.float32), f_ref, atol=2e-2, rtol=2e-2)
        assert jnp.allclose(o["z"].astype(jnp.float32), z_ref, atol=2e-2, rtol=2e-2)

    print("KERNEL_OK")
</pallas_src>

<mosaic_0001>
module attributes {stable_mosaic.version = 11 : i64} {
  func.func @simclr_fused_kernel(%arg0: i32, %arg1: memref<16x256xf32, #tpu.memory_space<vmem>>, %arg2: memref<256x128xbf16, #tpu.memory_space<vmem>>, %arg3: memref<1x128xf32, #tpu.memory_space<vmem>>, %arg4: memref<128x256xbf16, #tpu.memory_space<vmem>>, %arg5: memref<1x256xf32, #tpu.memory_space<vmem>>, %arg6: memref<256x256xbf16, #tpu.memory_space<vmem>>, %arg7: memref<1x256xf32, #tpu.memory_space<vmem>>, %arg8: memref<16x128xbf16, #tpu.memory_space<vmem>>, %arg9: memref<16x256xbf16, #tpu.memory_space<vmem>>) attributes {dimension_semantics = [#tpu.dimension_semantics<parallel>], iteration_bounds = array<i64: 1>, scalar_prefetch = 0 : i64, scratch_operands = 0 : i64, tpu.core_type = #tpu.core_type<tc>, window_params = [{transform_indices = @transform_0, window_bounds = array<i64: 16, 256>}, {pipeline_mode = #tpu.pipeline_mode<synchronous>, transform_indices = @transform_1, window_bounds = array<i64: 256, 128>}, {pipeline_mode = #tpu.pipeline_mode<synchronous>, transform_indices = @transform_2, window_bounds = array<i64: 1, 128>}, {pipeline_mode = #tpu.pipeline_mode<synchronous>, transform_indices = @transform_3, window_bounds = array<i64: 128, 256>}, {pipeline_mode = #tpu.pipeline_mode<synchronous>, transform_indices = @transform_4, window_bounds = array<i64: 1, 256>}, {pipeline_mode = #tpu.pipeline_mode<synchronous>, transform_indices = @transform_5, window_bounds = array<i64: 256, 256>}, {pipeline_mode = #tpu.pipeline_mode<synchronous>, transform_indices = @transform_6, window_bounds = array<i64: 1, 256>}, {transform_indices = @transform_7, window_bounds = array<i64: 16, 128>}, {transform_indices = @transform_8, window_bounds = array<i64: 16, 256>}]} {
    %c0 = arith.constant 0 : index
    %c0_0 = arith.constant 0 : index
    %0 = vector.load %arg1[%c0, %c0_0] : memref<16x256xf32, #tpu.memory_space<vmem>>, vector<16x256xf32>
    %1 = arith.truncf %0 : vector<16x256xf32> to vector<16x256xbf16>
    %c0_1 = arith.constant 0 : index
    %c0_2 = arith.constant 0 : index
    %2 = vector.load %arg2[%c0_1, %c0_2] : memref<256x128xbf16, #tpu.memory_space<vmem>>, vector<256x128xbf16>
    %cst = arith.constant dense<0.000000e+00> : vector<16x128xf32>
    %3 = tpu.matmul %1, %2, %cst {dimension_numbers = #tpu.dot_dimension_numbers<[1], [0], [0], [1], [0, 0, 1, 1], [], []>} : vector<16x256xbf16>, vector<256x128xbf16>, vector<16x128xf32> -> vector<16x128xf32>
    %c0_3 = arith.constant 0 : index
    %c0_4 = arith.constant 0 : index
    %4 = vector.load %arg3[%c0_3, %c0_4] : memref<1x128xf32, #tpu.memory_space<vmem>>, vector<1x128xf32>
    %5 = vector.broadcast %4 : vector<1x128xf32> to vector<16x128xf32>
    %6 = arith.addf %3, %5 : vector<16x128xf32>
    %7 = arith.truncf %6 : vector<16x128xf32> to vector<16x128xbf16>
    %c0_5 = arith.constant 0 : index
    %c0_6 = arith.constant 0 : index
    %8 = vector.load %arg4[%c0_5, %c0_6] : memref<128x256xbf16, #tpu.memory_space<vmem>>, vector<128x256xbf16>
    %cst_7 = arith.constant dense<0.000000e+00> : vector<16x256xf32>
    %9 = tpu.matmul %7, %8, %cst_7 {dimension_numbers = #tpu.dot_dimension_numbers<[1], [0], [0], [1], [0, 0, 1, 1], [], []>} : vector<16x128xbf16>, vector<128x256xbf16>, vector<16x256xf32> -> vector<16x256xf32>
    %c0_8 = arith.constant 0 : index
    %c0_9 = arith.constant 0 : index
    %10 = vector.load %arg5[%c0_8, %c0_9] : memref<1x256xf32, #tpu.memory_space<vmem>>, vector<1x256xf32>
    %11 = vector.broadcast %10 : vector<1x256xf32> to vector<16x256xf32>
    %12 = arith.addf %9, %11 : vector<16x256xf32>
    %cst_10 = arith.constant 0.000000e+00 : f32
    %13 = vector.broadcast %cst_10 : f32 to vector<16x256xf32>
    %14 = arith.maximumf %12, %13 : vector<16x256xf32>
    %15 = arith.truncf %14 : vector<16x256xf32> to vector<16x256xbf16>
    %c0_11 = arith.constant 0 : index
    %c0_12 = arith.constant 0 : index
    %16 = vector.load %arg6[%c0_11, %c0_12] : memref<256x256xbf16, #tpu.memory_space<vmem>>, vector<256x256xbf16>
    %cst_13 = arith.constant dense<0.000000e+00> : vector<16x256xf32>
    %17 = tpu.matmul %15, %16, %cst_13 {dimension_numbers = #tpu.dot_dimension_numbers<[1], [0], [0], [1], [0, 0, 1, 1], [], []>} : vector<16x256xbf16>, vector<256x256xbf16>, vector<16x256xf32> -> vector<16x256xf32>
    %c0_14 = arith.constant 0 : index
    %c0_15 = arith.constant 0 : index
    %18 = vector.load %arg7[%c0_14, %c0_15] : memref<1x256xf32, #tpu.memory_space<vmem>>, vector<1x256xf32>
    %19 = vector.broadcast %18 : vector<1x256xf32> to vector<16x256xf32>
    %20 = arith.addf %17, %19 : vector<16x256xf32>
    %21 = arith.truncf %6 : vector<16x128xf32> to vector<16x128xbf16>
    %c0_16 = arith.constant 0 : index
    %c0_17 = arith.constant 0 : index
    %22 = vector.load %arg8[%c0_16, %c0_17] : memref<16x128xbf16, #tpu.memory_space<vmem>>, vector<16x128xbf16>
    tpu.vector_store %arg8[%c0_16, %c0_17], %21 {strides = array<i32>} : memref<16x128xbf16, #tpu.memory_space<vmem>>, vector<16x128xbf16>,
    %23 = arith.truncf %20 : vector<16x256xf32> to vector<16x256xbf16>
    %c0_18 = arith.constant 0 : index
    %c0_19 = arith.constant 0 : index
    %24 = vector.load %arg9[%c0_18, %c0_19] : memref<16x256xbf16, #tpu.memory_space<vmem>>, vector<16x256xbf16>
    tpu.vector_store %arg9[%c0_18, %c0_19], %23 {strides = array<i32>} : memref<16x256xbf16, #tpu.memory_space<vmem>>, vector<16x256xbf16>,
    return
  }
  func.func @transform_0(%arg0: i32) -> (i32, i32) {
    %c0_i32 = arith.constant 0 : i32
    %c0_i32_0 = arith.constant 0 : i32
    return %arg0, %c0_i32 : i32, i32
  }
  func.func @transform_1(%arg0: i32) -> (i32, i32) {
    %c0_i32 = arith.constant 0 : i32
    %c0_i32_0 = arith.constant 0 : i32
    %c0_i32_1 = arith.constant 0 : i32
    return %c0_i32, %c0_i32_0 : i32, i32
  }
  func.func @transform_2(%arg0: i32) -> (i32, i32) {
    %c0_i32 = arith.constant 0 : i32
    %c0_i32_0 = arith.constant 0 : i32
    %c0_i32_1 = arith.constant 0 : i32
    return %c0_i32, %c0_i32_0 : i32, i32
  }
  func.func @transform_3(%arg0: i32) -> (i32, i32) {
    %c0_i32 = arith.constant 0 : i32
    %c0_i32_0 = arith.constant 0 : i32
    %c0_i32_1 = arith.constant 0 : i32
    return %c0_i32, %c0_i32_0 : i32, i32
  }
  func.func @transform_4(%arg0: i32) -> (i32, i32) {
    %c0_i32 = arith.constant 0 : i32
    %c0_i32_0 = arith.constant 0 : i32
    %c0_i32_1 = arith.constant 0 : i32
    return %c0_i32, %c0_i32_0 : i32, i32
  }
  func.func @transform_5(%arg0: i32) -> (i32, i32) {
    %c0_i32 = arith.constant 0 : i32
    %c0_i32_0 = arith.constant 0 : i32
    %c0_i32_1 = arith.constant 0 : i32
    return %c0_i32, %c0_i32_0 : i32, i32
  }
  func.func @transform_6(%arg0: i32) -> (i32, i32) {
    %c0_i32 = arith.constant 0 : i32
    %c0_i32_0 = arith.constant 0 : i32
    %c0_i32_1 = arith.constant 0 : i32
    return %c0_i32, %c0_i32_0 : i32, i32
  }
  func.func @transform_7(%arg0: i32) -> (i32, i32) {
    %c0_i32 = arith.constant 0 : i32
    %c0_i32_0 = arith.constant 0 : i32
    return %arg0, %c0_i32 : i32, i32
  }
  func.func @transform_8(%arg0: i32) -> (i32, i32) {
    %c0_i32 = arith.constant 0 : i32
    %c0_i32_0 = arith.constant 0 : i32
    return %arg0, %c0_i32 : i32, i32
  }
}

</mosaic_0001>

<bundles_post_ra>
// kernel: simclr_forward.1
= control target key start
LH: loop header
LB: loop body
LE: loop exit
PB: predicated region body
PF: predicated region fallthrough
CT: control target
= control target key end

     0   :  { %v836_v38 = vmov 0   ;;  %s1104_s1 = inlined_call_operand.vmem [shape: bf16[256,128], index: 1, kind: input, shape index: {}]   ;;  %s1105_s0 = inlined_call_operand.vmem [shape: f32[16,256], index: 0, kind: input, shape index: {}]   ;;  %s1106_s3 = inlined_call_operand.vmem [shape: bf16[128,256], index: 3, kind: input, shape index: {}]   ;;  %s1107_s5 = inlined_call_operand.vmem [shape: bf16[256,256], index: 5, kind: input, shape index: {}]   ;;  %s1108_s2 = inlined_call_operand.vmem [shape: f32[1,128], index: 2, kind: input, shape index: {}]   ;;  %s1109_s7 = inlined_call_operand.vmem [shape: bf16[16,128], index: 7, kind: output, shape index: {0}]   ;;  %s1110_s4 = inlined_call_operand.vmem [shape: f32[1,256], index: 4, kind: input, shape index: {}]   ;;  %s1111_s6 = inlined_call_operand.vmem [shape: f32[1,256], index: 6, kind: input, shape index: {}]   ;;  %s1112_s8 = inlined_call_operand.vmem [shape: bf16[16,256], index: 8, kind: output, shape index: {1}]  }
   0x1   :  { %v748_v0 = vld [vmem:[%s1104_s1 + $0x78] sm:$0xff]   ;;  %v750_v2 = vld [vmem:[%s1104_s1 + $0x70] sm:$0xff]   ;;  %v752_v4 = vld [vmem:[%s1104_s1 + $0x68] sm:$0xff]  }
   0x2   :  { %v749_v1 = vld [vmem:[%s1104_s1 + $0x38] sm:$0xff]   ;;  %725 = vmatprep.subr.bf16.mxu1 %v748_v0  ;;  %v751_v3 = vld [vmem:[%s1104_s1 + $0x30] sm:$0xff]   ;;  %v753_v5 = vld [vmem:[%s1104_s1 + $0x28] sm:$0xff]  }
   0x3   :  { %726 = vmatpush3.bf16.msra.mxu1 %v749_v1  ;;  %v754_v6 = vld [vmem:[%s1104_s1 + $0x60] sm:$0xff]   ;;  %v756_v8 = vld [vmem:[%s1104_s1 + $0x58] sm:$0xff]   ;;  %v758_v10 = vld [vmem:[%s1104_s1 + $0x50] sm:$0xff]  }
   0x4   :  { %727 = vmatprep.subr.bf16.mxu1 %v750_v2  ;;  %v755_v7 = vld [vmem:[%s1104_s1 + $0x20] sm:$0xff]   ;;  %v757_v9 = vld [vmem:[%s1104_s1 + $0x18] sm:$0xff]   ;;  %v30_v11 = vld [vmem:[%s1105_s0 + $0x8] sm:$0xff] }
   0x5   :  { %v32_v12 = vld [vmem:[%s1105_s0 + $0x18] sm:$0xff]  ;;  %v759_v14 = vld [vmem:[%s1104_s1 + $0x10] sm:$0xff]   ;;  %v760_v15 = vld [vmem:[%s1104_s1 + $0x48] sm:$0xff]  }
   0x6   :  { %v34_v13 = vpack.c.bf16 %v32_v12, %v30_v11  ;;  %v761_v16 = vld [vmem:[%s1104_s1 + $0x8] sm:$0xff]   ;;  %v762_v17 = vld [vmem:[%s1104_s1 + $0x40] sm:$0xff]   ;;  %v31_v20 = vld [vmem:[%s1105_s0 + $0x10] sm:$0xff] }
   0x7   :  { %728 = vmatpush3.bf16.msra.mxu1 %v751_v3  ;;  %v763_v18 = vld [vmem:[%s1104_s1] sm:$0xff]   ;;  %v766_v21 = vld [vmem:[%s1106_s3 + $0x74] ss:$8 sps:$4 sm:$0xff]   ;;  %v764_v23 = vld [vmem:[%s1106_s3 + $0x70] ss:$8 sps:$4 sm:$0xff]  }
   0x8   :  { %729 = vmatprep.subr.bf16.mxu1 %v752_v4  ;;  %202 = vmatprep.mubr.bf16.mxu1 %v34_v13  ;;  %v29_v19 = vld [vmem:[%s1105_s0] sm:$0xff]  ;;  %v772_v26 = vld [vmem:[%s1106_s3 + $0x54] ss:$8 sps:$4 sm:$0xff]   ;;  %v770_v27 = vld [vmem:[%s1106_s3 + $0x50] ss:$8 sps:$4 sm:$0xff]  }
   0x9   :  { %v33_v22 = vpack.c.bf16 %v31_v20, %v29_v19  ;;  %v769_v24 = vld [vmem:[%s1106_s3 + $0x64] ss:$8 sps:$4 sm:$0xff]   ;;  %v767_v25 = vld [vmem:[%s1106_s3 + $0x60] ss:$8 sps:$4 sm:$0xff]   ;;  %v778_v30 = vld [vmem:[%s1106_s3 + $0x34] ss:$8 sps:$4 sm:$0xff]  }
   0xa   :  { %v775_v28 = vld [vmem:[%s1106_s3 + $0x44] ss:$8 sps:$4 sm:$0xff]   ;;  %v773_v29 = vld [vmem:[%s1106_s3 + $0x40] ss:$8 sps:$4 sm:$0xff]   ;;  %v776_v31 = vld [vmem:[%s1106_s3 + $0x30] ss:$8 sps:$4 sm:$0xff]  }
   0xb   :  { %730 = vmatpush3.bf16.msra.mxu1 %v753_v5  ;;  %v781_v32 = vld [vmem:[%s1106_s3 + $0x24] ss:$8 sps:$4 sm:$0xff]   ;;  %v779_v33 = vld [vmem:[%s1106_s3 + $0x20] ss:$8 sps:$4 sm:$0xff]   ;;  %v784_v34 = vld [vmem:[%s1106_s3 + $0x14] ss:$8 sps:$4 sm:$0xff]  }
   0xc   :  { %731 = vmatprep.subr.bf16.mxu1 %v754_v6  ;;  %v782_v35 = vld [vmem:[%s1106_s3 + $0x10] ss:$8 sps:$4 sm:$0xff]   ;;  %v787_v36 = vld [vmem:[%s1106_s3 + $0x4] ss:$8 sps:$4 sm:$0xff]   ;;  %v785_v37 = vld [vmem:[%s1106_s3] ss:$8 sps:$4 sm:$0xff]  }
   0xd   :  { %v788_v39 = vld [vmem:[%s1107_s5 + $0x74] ss:$8 sps:$4 sm:$0xff]   ;;  %v790_v40 = vld [vmem:[%s1107_s5 + $0x70] ss:$8 sps:$4 sm:$0xff]   ;;  %v791_v41 = vld [vmem:[%s1107_s5 + $0x64] ss:$8 sps:$4 sm:$0xff]  }
   0xe   :  { %573 = vmatprep.subr.bf16.mxu0 %v788_v39  ;;  %v793_v42 = vld [vmem:[%s1107_s5 + $0x60] ss:$8 sps:$4 sm:$0xff]   ;;  %v794_v43 = vld [vmem:[%s1107_s5 + $0x54] ss:$8 sps:$4 sm:$0xff]   ;;  %v796_v44 = vld [vmem:[%s1107_s5 + $0x50] ss:$8 sps:$4 sm:$0xff]  }
   0xf   :  { %732 = vmatpush3.bf16.msra.mxu1 %v755_v7  ;;  %574 = vmatpush1.bf16.msra.mxu0 %v790_v40  ;;  %v797_v45 = vld [vmem:[%s1107_s5 + $0x44] ss:$8 sps:$4 sm:$0xff]   ;;  %v799_v46 = vld [vmem:[%s1107_s5 + $0x40] ss:$8 sps:$4 sm:$0xff]   ;;  %v800_v47 = vld [vmem:[%s1107_s5 + $0x34] ss:$8 sps:$4 sm:$0xff]  }
  0x10   :  { %733 = vmatprep.subr.bf16.mxu1 %v756_v8  ;;  %575 = vmatprep.subr.bf16.mxu0 %v791_v41  ;;  %v802_v48 = vld [vmem:[%s1107_s5 + $0x30] ss:$8 sps:$4 sm:$0xff]   ;;  %v803_v49 = vld [vmem:[%s1107_s5 + $0x24] ss:$8 sps:$4 sm:$0xff]   ;;  %v805_v50 = vld [vmem:[%s1107_s5 + $0x20] ss:$8 sps:$4 sm:$0xff]  }
  0x11   :  { %v806_v51 = vld [vmem:[%s1107_s5 + $0x14] ss:$8 sps:$4 sm:$0xff]   ;;  %v808_v52 = vld [vmem:[%s1107_s5 + $0x10] ss:$8 sps:$4 sm:$0xff]   ;;  %v809_v53 = vld [vmem:[%s1107_s5 + $0x4] ss:$8 sps:$4 sm:$0xff]  }
  0x12   :  { %v811_v54 = vld [vmem:[%s1107_s5] ss:$8 sps:$4 sm:$0xff]   ;;  %v812_v55 = vld [vmem:[%s1107_s5 + $0xf4] ss:$8 sps:$4 sm:$0xff]   ;;  %v814_v56 = vld [vmem:[%s1107_s5 + $0xf0] ss:$8 sps:$4 sm:$0xff]  }
  0x13   :  { %734 = vmatpush3.bf16.msra.mxu1 %v757_v9  ;;  %576 = vmatpush1.bf16.msra.mxu0 %v793_v42  ;;  %v815_v57 = vld [vmem:[%s1107_s5 + $0xe4] ss:$8 sps:$4 sm:$0xff]   ;;  %v817_v58 = vld [vmem:[%s1107_s5 + $0xe0] ss:$8 sps:$4 sm:$0xff]   ;;  %v818_v59 = vld [vmem:[%s1107_s5 + $0xd4] ss:$8 sps:$4 sm:$0xff]  }
  0x14   :  { %735 = vmatprep.subr.bf16.mxu1 %v758_v10  ;;  %577 = vmatprep.subr.bf16.mxu0 %v794_v43  ;;  %v820_v60 = vld [vmem:[%s1107_s5 + $0xd0] ss:$8 sps:$4 sm:$0xff]   ;;  %v821_v61 = vld [vmem:[%s1107_s5 + $0xc4] ss:$8 sps:$4 sm:$0xff]   ;;  %v823_v62 = vld [vmem:[%s1107_s5 + $0xc0] ss:$8 sps:$4 sm:$0xff]  }
  0x15   :  { %v824_v63 = vld [vmem:[%s1107_s5 + $0xb4] ss:$8 sps:$4 sm:$0xff]   ;;  %v826_v0 = vld [vmem:[%s1107_s5 + $0xb0] ss:$8 sps:$4 sm:$0xff]   ;;  %v647_v5 = vld [vmem:[%s1108_s2] ss:$0 sm:$0xff] }
  0x16   :  { %v827_v11 = vld [vmem:[%s1107_s5 + $0xa4] ss:$8 sps:$4 sm:$0xff]   ;;  %v829_v12 = vld [vmem:[%s1107_s5 + $0xa0] ss:$8 sps:$4 sm:$0xff]   ;;  %v830_v13 = vld [vmem:[%s1107_s5 + $0x94] ss:$8 sps:$4 sm:$0xff]  }
  0x17   :  { %736 = vmatpush3.bf16.msra.mxu1 %v759_v14  ;;  %578 = vmatpush1.bf16.msra.mxu0 %v796_v44  ;;  %v832_v14 = vld [vmem:[%s1107_s5 + $0x90] ss:$8 sps:$4 sm:$0xff]  }
  0x18   :  { %737 = vmatprep.subr.bf16.mxu1 %v760_v15  ;;  %579 = vmatprep.subr.bf16.mxu0 %v797_v45  ;;  %v833_v15 = vld [vmem:[%s1107_s5 + $0x84] ss:$8 sps:$4 sm:$0xff]  }
  0x1b   :  { %738 = vmatpush3.bf16.msra.mxu1 %v761_v16  ;;  %580 = vmatpush1.bf16.msra.mxu0 %v799_v46  ;;  %v835_v16 = vld [vmem:[%s1107_s5 + $0x80] ss:$8 sps:$4 sm:$0xff]  }
  0x1c   :  { %739 = vmatprep.subr.bf16.mxu1 %v762_v17  ;;  %581 = vmatprep.subr.bf16.mxu0 %v800_v47  ;;  %v230_v17 = vlaneseq }
  0x1f   :  { %740 = vmatpush3.bf16.msra.mxu1 %v763_v18  ;;  %582 = vmatpush1.bf16.msra.mxu0 %v802_v48  ;;  %v231_v18 = vshrl.u32 %v230_v17, 7 }
  0x20   :  { %320 = vmatprep.subr.bf16.mxu1 %v766_v21  ;;  %583 = vmatprep.subr.bf16.mxu0 %v803_v49  ;;  %v228_v21 = vld [vmem:[%s1110_s4] sm:$0x3] }
  0x21   :  { %v236_v19 = vsub.s32 1, %v231_v18  ;;  %v232_v20 = vsub.s32 0, %v231_v18 }
  0x22   :  { %203 = vmatmul.mubr.bf16.vlgmr.msra.gmra.mxu1 %v33_v22 }
  0x23   :  { %321 = vmatpush1.bf16.msra.mxu1 %v764_v23  ;;  %352 = vmatprep.mubr.bf16.mxu1 %v836_v38  ;;  %v237_v23 = vrot.slane %v228_v21, %v236_v19  ;;  %v401_v38 = vld [vmem:[%s1111_s6] sm:$0x3] }
  0x24   :  { %322 = vmatprep.subr.bf16.mxu1 %v769_v24  ;;  %584 = vmatpush1.bf16.msra.mxu0 %v805_v50  ;;  %v233_v24 = vrot.slane %v228_v21, %v232_v20  ;;  %v406_v39 = vrot.slane %v401_v38, %v232_v20  ;;  %v410_v40 = vrot.slane %v401_v38, %v236_v19 }
  0x25   :  { %585 = vmatprep.subr.bf16.mxu0 %v806_v51 }
  0x27   :  { %323 = vmatpush1.bf16.msra.mxu1 %v767_v25 }
  0x28   :  { %324 = vmatprep.subr.bf16.mxu1 %v772_v26  ;;  %586 = vmatpush1.bf16.msra.mxu0 %v808_v52 }
  0x29   :  { %587 = vmatprep.subr.bf16.mxu0 %v809_v53 }
  0x2b   :  { %325 = vmatpush1.bf16.msra.mxu1 %v770_v27 }
  0x2c   :  { %326 = vmatprep.subr.bf16.mxu1 %v775_v28  ;;  %588 = vmatpush1.bf16.msra.mxu0 %v811_v54 }
  0x2d   :  { %589 = vmatprep.subr.bf16.mxu0 %v812_v55 }
  0x2f   :  { %327 = vmatpush1.bf16.msra.mxu1 %v773_v29 }
  0x30   :  { %328 = vmatprep.subr.bf16.mxu1 %v778_v30  ;;  %590 = vmatpush2.bf16.msra.mxu0 %v814_v56 }
  0x31   :  { %591 = vmatprep.subr.bf16.mxu0 %v815_v57 }
  0x33   :  { %329 = vmatpush1.bf16.msra.mxu1 %v776_v31 }
  0x34   :  { %330 = vmatprep.subr.bf16.mxu1 %v781_v32  ;;  %592 = vmatpush2.bf16.msra.mxu0 %v817_v58 }
  0x35   :  { %593 = vmatprep.subr.bf16.mxu0 %v818_v59 }
  0x37   :  { %331 = vmatpush1.bf16.msra.mxu1 %v779_v33 }
  0x38   :  { %332 = vmatprep.subr.bf16.mxu1 %v784_v34  ;;  %594 = vmatpush2.bf16.msra.mxu0 %v820_v60 }
  0x39   :  { %595 = vmatprep.subr.bf16.mxu0 %v821_v61 }
  0x3b   :  { %333 = vmatpush1.bf16.msra.mxu1 %v782_v35 }
  0x3c   :  { %334 = vmatprep.subr.bf16.mxu1 %v787_v36  ;;  %596 = vmatpush2.bf16.msra.mxu0 %v823_v62 }
  0x3d   :  { %597 = vmatprep.subr.bf16.mxu0 %v824_v63 }
  0x3f   :  { %335 = vmatpush1.bf16.msra.mxu1 %v785_v37 }
  0x40   :  { %598 = vmatpush2.bf16.msra.mxu0 %v826_v0 }
  0x41   :  { %599 = vmatprep.subr.bf16.mxu0 %v827_v11 }
  0x44   :  { %600 = vmatpush2.bf16.msra.mxu0 %v829_v12 }
  0x45   :  { %601 = vmatprep.subr.bf16.mxu0 %v830_v13 }
  0x48   :  { %602 = vmatpush2.bf16.msra.mxu0 %v832_v14 }
  0x49   :  { %603 = vmatprep.subr.bf16.mxu0 %v833_v15 }
  0x4c   :  { %604 = vmatpush2.bf16.msra.mxu0 %v835_v16 }
  0xe2   :  { %v741_v1 = vpop.f32.mrf.mxu1 }
  0xe4   :  { %v742_v2 = vpop.f32.mrf.mxu1 }
  0xe5   :  { %v743_v4 = vadd.f32 %v742_v2, %v741_v1 }
  0xe6   :  { %v744_v3 = vpop.f32.mrf.mxu1 }
  0xe7   :  { %v205_v8 = vadd.f32 %v743_v4, %v647_v5 }
  0xe8   :  { %v745_v6 = vpop.f32.mrf.mxu1 }
  0xe9   :  { %v746_v7 = vadd.f32 %v745_v6, %v744_v3 }
  0xeb   :  { %v208_v9 = vadd.f32 %v746_v7, %v647_v5 }
  0xed   :  { %v211_v10 = vpack.c.bf16 %v208_v9, %v205_v8 }
  0xef   :  { %724 = vst [vmem:[%s1109_s7] sm:$0xff] %v211_v10   ;;  %353 = vmatmul.mubr.bf16.vlgmr.msra.gmra.mxu1 %v211_v10 }
 0x1af   :  { %v354_v22 = vpop.f32.mrf.mxu1 }
 0x1b0   :  { %v355_v29 = vadd.f32 %v354_v22, %v233_v24 }
 0x1b1   :  { %v356_v25 = vpop.f32.mrf.mxu1 }
 0x1b2   :  { %v357_v27 = vadd.f32 %v356_v25, %v237_v23  ;;  %v363_v35 = vmax.f32 %v355_v29, 0.0 }
 0x1b3   :  { %v358_v26 = vpop.f32.mrf.mxu1 }
 0x1b4   :  { %v359_v28 = vadd.f32 %v358_v26, %v233_v24  ;;  %v364_v33 = vmax.f32 %v357_v27, 0.0 }
 0x1b5   :  { %v360_v30 = vpop.f32.mrf.mxu1 }
 0x1b6   :  { %v361_v31 = vadd.f32 %v360_v30, %v237_v23  ;;  %v365_v32 = vmax.f32 %v359_v28, 0.0 }
 0x1b8   :  { %v366_v34 = vmax.f32 %v361_v31, 0.0  ;;  %v367_v37 = vpack.c.bf16 %v365_v32, %v363_v35 }
 0x1ba   :  { %v368_v36 = vpack.c.bf16 %v366_v34, %v364_v33 }
 0x1bc   :  { %605 = vmatprep.mubr.bf16.mxu0 %v368_v36 }
 0x1bd   :  { %606 = vmatmul.mubr.bf16.vlgmr.msra.gmra.mxu0 %v367_v37 }
 0x27d   :  { %v607_v41 = vpop.f32.mrf.mxu0 }
 0x27e   :  { %v608_v43 = vadd.f32 %v607_v41, %v406_v39 }
 0x27f   :  { %v609_v42 = vpop.f32.mrf.mxu0 }
 0x280   :  { %v610_v44 = vadd.f32 %v609_v42, %v410_v40 }
 0x281   :  { %v611_v45 = vpop.f32.mrf.mxu0 }
 0x282   :  { %v718_v46 = vpack.c.bf16 %v610_v44, %v608_v43  ;;  %v612_v48 = vadd.f32 %v611_v45, %v406_v39 }
 0x283   :  { %v613_v47 = vpop.f32.mrf.mxu0 }
 0x284   :  { %637 = vst [vmem:[%s1112_s8] sm:$0xff] %v718_v46  ;;  %v614_v49 = vadd.f32 %v613_v47, %v410_v40 }
 0x286   :  { %v719_v50 = vpack.c.bf16 %v614_v49, %v612_v48 }
 0x288   :  { %638 = vst [vmem:[%s1112_s8 + $0x8] sm:$0xff] %v719_v50 }

</bundles_post_ra>
